<compile_context>
chip_gen: v7x
topology: tpu7x:2x2x1
jax: 0.10.0
libtpu: 0.0.40
codegen_flags: <defaults>
</compile_context>

<pallas_src>
import functools

import jax
import jax.numpy as jnp
from jax.experimental import pallas as pl
from jax.experimental.pallas import tpu as pltpu


_FUSED_MAX_F32_BYTES = 3 << 20    # fused single-pass path when f32 x bytes <= this
_TILE_TARGET_BYTES = 2 << 20      # per-input-tile DMA payload for the streaming passes
_VMEM_LIMIT_BYTES = 32 << 20      # safe scoped-VMEM limit on v5e/v6e/v7x


# ---------------------------------------------------------------------------
# Fused single-pass kernel: x resident in VMEM -> exact centered variance,
# normalize in the same kernel (1 HBM read + 1 HBM write total).
# ---------------------------------------------------------------------------
def _fused_bn_kernel(eps, count):
    inv_count = 1.0 / count

    def kernel(x_ref, w_ref, b_ref, o_ref, mean_ref, var_ref):
        x = x_ref[...].astype(jnp.float32)                          # (N, C, L)
        s = jnp.sum(jnp.sum(x, axis=2, keepdims=True), axis=0, keepdims=True)
        mean = s * inv_count                                        # (1, C, 1)
        d = x - mean
        var = jnp.sum(jnp.sum(d * d, axis=2, keepdims=True), axis=0,
                      keepdims=True) * inv_count                    # biased var
        inv_std = jax.lax.rsqrt(var + eps)
        scale = w_ref[...][None] * inv_std                          # (1, C, 1)
        shift = b_ref[...][None] - mean * scale
        o_ref[...] = (x * scale + shift).astype(o_ref.dtype)
        mean_ref[...] = mean[0]                                     # (C, 1)
        var_ref[...] = var[0]

    return kernel


def _fused_forward(x_ncl, weight_c1, bias_c1, eps):
    n, c, l = x_ncl.shape
    out, mean_c1, var_c1 = pl.pallas_call(
        _fused_bn_kernel(eps, float(n * l)),
        grid=(1,),
        in_specs=[
            pl.BlockSpec((n, c, l), lambda i: (0, 0, 0)),
            pl.BlockSpec((c, 1), lambda i: (0, 0)),
            pl.BlockSpec((c, 1), lambda i: (0, 0)),
        ],
        out_specs=[
            pl.BlockSpec((n, c, l), lambda i: (0, 0, 0)),
            pl.BlockSpec((c, 1), lambda i: (0, 0)),
            pl.BlockSpec((c, 1), lambda i: (0, 0)),
        ],
        out_shape=[
            jax.ShapeDtypeStruct((n, c, l), x_ncl.dtype),
            jax.ShapeDtypeStruct((c, 1), jnp.float32),
            jax.ShapeDtypeStruct((c, 1), jnp.float32),
        ],
        compiler_params=pltpu.CompilerParams(vmem_limit_bytes=_VMEM_LIMIT_BYTES),
    )(x_ncl, weight_c1, bias_c1)
    return out, mean_c1[:, 0], var_c1[:, 0]


# ---------------------------------------------------------------------------
# Tiled pass 1: per-row sum and sum-of-squares on the (N*C, L) view.
# Row axis "parallel" (per-row-tile partial outputs), column axis "arbitrary".
# ---------------------------------------------------------------------------
def _stats_kernel(n_chunks, acc_w, n_acc=4):
    def kernel(x_ref, sum_ref, sq_ref):
        @pl.when(pl.program_id(1) == 0)
        def _():
            sum_ref[...] = jnp.zeros_like(sum_ref)
            sq_ref[...] = jnp.zeros_like(sq_ref)

        x = x_ref[...].astype(jnp.float32)                # (tile_r, tile_c)
        k = min(n_acc, n_chunks)
        acc_s = [None] * k
        acc_q = [None] * k
        # Lane-aligned static slices; independent accumulators keep the VALU
        # slots fed instead of one long dependent add chain.
        for j in range(n_chunks):
            chunk = x[:, j * acc_w:(j + 1) * acc_w]
            slot = j % k
            if acc_s[slot] is None:
                acc_s[slot] = chunk
                acc_q[slot] = chunk * chunk
            else:
                acc_s[slot] = acc_s[slot] + chunk
                acc_q[slot] = acc_q[slot] + chunk * chunk
        tot_s = acc_s[0]
        tot_q = acc_q[0]
        for slot in range(1, k):
            tot_s = tot_s + acc_s[slot]
            tot_q = tot_q + acc_q[slot]
        sum_ref[...] += tot_s
        sq_ref[...] += tot_q

    return kernel


def _row_stats_pallas(x_2d, tile_r, tile_c):
    nr, lp = x_2d.shape
    acc_w = _pick_acc_width(tile_c, lp)
    n_chunks = tile_c // acc_w
    sum_rw, sq_rw = pl.pallas_call(
        _stats_kernel(n_chunks, acc_w),
        grid=(nr // tile_r, lp // tile_c),
        in_specs=[pl.BlockSpec((tile_r, tile_c), lambda i, j: (i, j))],
        out_specs=[
            pl.BlockSpec((tile_r, acc_w), lambda i, j: (i, 0)),
            pl.BlockSpec((tile_r, acc_w), lambda i, j: (i, 0)),
        ],
        out_shape=[
            jax.ShapeDtypeStruct((nr, acc_w), jnp.float32),
            jax.ShapeDtypeStruct((nr, acc_w), jnp.float32),
        ],
        compiler_params=pltpu.CompilerParams(
            dimension_semantics=("parallel", "arbitrary"),
            vmem_limit_bytes=_VMEM_LIMIT_BYTES),
    )(x_2d)
    row_sum = jnp.sum(sum_rw, axis=-1)    # tiny (N*C, acc_w) -> (N*C,)
    row_sq = jnp.sum(sq_rw, axis=-1)
    return row_sum, row_sq


# ---------------------------------------------------------------------------
# Tiled pass 2: out = x * scale[row] + shift[row] on the (N*C, L) view.
# ---------------------------------------------------------------------------
def _norm_kernel(x_ref, scale_ref, shift_ref, o_ref):
    x = x_ref[...].astype(jnp.float32)
    o_ref[...] = (x * scale_ref[...] + shift_ref[...]).astype(o_ref.dtype)


def _row_normalize_pallas(x_2d, scale_r1, shift_r1, tile_r, tile_c, out_dtype):
    nr, lp = x_2d.shape
    return pl.pallas_call(
        _norm_kernel,
        grid=(nr // tile_r, lp // tile_c),
        in_specs=[
            pl.BlockSpec((tile_r, tile_c), lambda i, j: (i, j)),
            pl.BlockSpec((tile_r, 1), lambda i, j: (i, 0)),
            pl.BlockSpec((tile_r, 1), lambda i, j: (i, 0)),
        ],
        out_specs=pl.BlockSpec((tile_r, tile_c), lambda i, j: (i, j)),
        out_shape=jax.ShapeDtypeStruct((nr, lp), out_dtype),
        compiler_params=pltpu.CompilerParams(
            dimension_semantics=("parallel", "parallel"),   # 2-TC shard on v7x
            vmem_limit_bytes=_VMEM_LIMIT_BYTES),
    )(x_2d, scale_r1, shift_r1)


# ---------------------------------------------------------------------------
# Tiling heuristics (all trace-time Python on static shapes).
# ---------------------------------------------------------------------------
def _pick_block(extent, unit, cap):
    """Largest multiple of `unit` dividing `extent` and <= cap; 0 if none."""
    if extent < unit or extent % unit != 0:
        return 0
    t = max(unit, (min(cap, extent) // unit) * unit)
    while t >= unit:
        if extent % t == 0:
            return t
        t -= unit
    return 0


def _pick_acc_width(tile_c, l_total):
    """Lane width of the resident stats accumulator (bounds the unroll depth)."""
    for w in (512, 256, 128):
        if tile_c % w == 0 and w * 16 <= l_total:
            return w
    return 128 if tile_c % 128 == 0 else tile_c


def _choose_tiles(n_rows, l_cols, itemsize, target_bytes):
    """Pick (tile_r, tile_c): rows multiple of 8 (or full), cols multiple of
    128 (or full), product ~ target_bytes of the input dtype."""
    target_elems = max(1, target_bytes // itemsize)
    tile_c = _pick_block(l_cols, 128, max(128, target_elems // 8))
    if tile_c == 0:
        # L not a multiple of 128 (small case): full-extent lane block.
        # TODO(synk): masked remainder tiles would avoid both this fallback and
        # the pad copy used for large non-128-multiple L.
        tile_c = l_cols
    tile_r = _pick_block(n_rows, 8, max(8, target_elems // tile_c))
    if tile_r == 0:
        tile_r = n_rows
    return tile_r, tile_c


# ---------------------------------------------------------------------------
# Functional forward matching TransLayer_rule4.
# ---------------------------------------------------------------------------
def translayer_rule4_forward(x, weight, bias, running_mean, running_var,
                             eps, momentum, training=True,
                             track_running_stats=True,
                             fused_max_bytes=_FUSED_MAX_F32_BYTES):
    n, c = x.shape[0], x.shape[1]
    l = 1
    for s in x.shape[2:]:
        l *= int(s)
    count = float(n * l)

    w32 = (weight.astype(jnp.float32) if weight is not None
           else jnp.ones((c,), jnp.float32))
    b32 = (bias.astype(jnp.float32) if bias is not None
           else jnp.zeros((c,), jnp.float32))

    use_batch_stats = training or not track_running_stats
    fused_ok = use_batch_stats and (n * c * l * 4 <= fused_max_bytes)

    if fused_ok:
        x_ncl = x.reshape(n, c, l)                        # free view of NCHW
        out_ncl, mean, var = _fused_forward(
            x_ncl, w32.reshape(c, 1), b32.reshape(c, 1), eps)
        out = out_ncl.reshape(x.shape)
    else:
        x_2d = x.reshape(n * c, l)                        # free view of NCHW
        itemsize = x.dtype.itemsize
        lp = l
        if l % 128 != 0 and l * 8 * itemsize > _TILE_TARGET_BYTES:
            # Large, non-128-multiple spatial size: pad the lane axis instead
            # of a huge full-extent block (zeros don't perturb sum / sumsq).
            lp = ((l + 127) // 128) * 128
            x_2d = jnp.pad(x_2d, ((0, 0), (0, lp - l)))
        tile_r, tile_c = _choose_tiles(n * c, lp, itemsize, _TILE_TARGET_BYTES)

        if use_batch_stats:
            row_sum, row_sq = _row_stats_pallas(x_2d, tile_r, tile_c)
            ch_sum = row_sum.reshape(n, c).sum(axis=0)
            ch_sq = row_sq.reshape(n, c).sum(axis=0)
            mean = ch_sum / count
            # One-pass E[x^2]-mean^2 in f32 (clamped); the fused path uses the
            # exact centered variance when x fits in VMEM.
            var = jnp.maximum(ch_sq / count - mean * mean, 0.0)
        else:
            mean = running_mean.astype(jnp.float32)
            var = running_var.astype(jnp.float32)

        inv_std = jax.lax.rsqrt(var + eps)
        scale_c = w32 * inv_std
        shift_c = b32 - mean * scale_c
        scale_r = jnp.broadcast_to(scale_c[None, :], (n, c)).reshape(n * c, 1)
        shift_r = jnp.broadcast_to(shift_c[None, :], (n, c)).reshape(n * c, 1)

        out_2d = _row_normalize_pallas(x_2d, scale_r, shift_r,
                                       tile_r, tile_c, x.dtype)
        if lp != l:
            out_2d = out_2d[:, :l]
        out = out_2d.reshape(x.shape)

    new_rm, new_rv = running_mean, running_var
    if use_batch_stats and track_running_stats:
        # Spec module blends the *biased* batch variance into running_var.
        new_rm = (1 - momentum) * running_mean + momentum * mean
        new_rv = (1 - momentum) * running_var + momentum * var
    return out, new_rm, new_rv


# ---------------------------------------------------------------------------
# Self-test.
# ---------------------------------------------------------------------------
if __name__ == "__main__":
    eps = 1e-5
    momentum = 0.1
    key = jax.random.PRNGKey(0)

    def train_ref(x, w, b, rm, rv):
        mean = jnp.mean(x, axis=(0, 2, 3))
        var = jnp.var(x, axis=(0, 2, 3))                  # biased (ddof=0)
        shp = (1, -1, 1, 1)
        out = ((x - mean.reshape(shp)) / jnp.sqrt(var.reshape(shp) + eps)
               * w.reshape(shp) + b.reshape(shp))
        return out, (1 - momentum) * rm + momentum * mean, \
            (1 - momentum) * rv + momentum * var

    def eval_ref(x, w, b, rm, rv):
        shp = (1, -1, 1, 1)
        return ((x - rm.reshape(shp)) / jnp.sqrt(rv.reshape(shp) + eps)
                * w.reshape(shp) + b.reshape(shp))

    fwd_train = jax.jit(functools.partial(
        translayer_rule4_forward, eps=eps, momentum=momentum,
        training=True, track_running_stats=True))
    fwd_train_tiled = jax.jit(functools.partial(
        translayer_rule4_forward, eps=eps, momentum=momentum,
        training=True, track_running_stats=True, fused_max_bytes=0))
    fwd_eval = jax.jit(functools.partial(
        translayer_rule4_forward, eps=eps, momentum=momentum,
        training=False, track_running_stats=True))

    def make_case(k, shape):
        kx, _ = jax.random.split(k)
        C = shape[1]
        x = jax.random.normal(kx, shape, jnp.float32) * 2.0 + 0.5
        w = 1.0 + 0.1 * jnp.arange(C, dtype=jnp.float32)
        b = 0.01 * jnp.arange(C, dtype=jnp.float32)
        rm = 0.05 * jnp.arange(C, dtype=jnp.float32)
        rv = 1.0 + 0.02 * jnp.arange(C, dtype=jnp.float32)
        return x, w, b, rm, rv

    keys = jax.random.split(key, 4)

    # Case 1: small activation -> fused single-pass kernel.
    x, w, b, rm, rv = make_case(keys[0], (2, 4, 16, 16))
    out, nrm, nrv = jax.block_until_ready(fwd_train(x, w, b, rm, rv))
    ro, rrm, rrv = train_ref(x, w, b, rm, rv)
    assert out.shape == x.shape
    assert jnp.allclose(out, ro, atol=1e-4, rtol=1e-4), "fused output mismatch"
    assert jnp.allclose(nrm, rrm, atol=1e-4, rtol=1e-4), "fused running_mean mismatch"
    assert jnp.allclose(nrv, rrv, atol=1e-4, rtol=1e-4), "fused running_var mismatch"

    # Case 2: tiled two-pass path (forced), L multiple of 128, rows multiple of 8.
    x, w, b, rm, rv = make_case(keys[1], (4, 8, 32, 32))
    out, nrm, nrv = jax.block_until_ready(fwd_train_tiled(x, w, b, rm, rv))
    ro, rrm, rrv = train_ref(x, w, b, rm, rv)
    assert jnp.allclose(out, ro, atol=1e-4, rtol=1e-4), "tiled output mismatch"
    assert jnp.allclose(nrm, rrm, atol=1e-4, rtol=1e-4), "tiled running_mean mismatch"
    assert jnp.allclose(nrv, rrv, atol=1e-4, rtol=1e-4), "tiled running_var mismatch"

    # Case 3: tiled path with H*W not a multiple of 128 (full-extent lane fallback).
    x, w, b, rm, rv = make_case(keys[2], (2, 4, 10, 10))
    out, nrm, nrv = jax.block_until_ready(fwd_train_tiled(x, w, b, rm, rv))
    ro, rrm, rrv = train_ref(x, w, b, rm, rv)
    assert jnp.allclose(out, ro, atol=1e-4, rtol=1e-4), "odd-L output mismatch"
    assert jnp.allclose(nrv, rrv, atol=1e-4, rtol=1e-4), "odd-L running_var mismatch"

    # Case 4: eval mode (running statistics, normalize-only path).
    x, w, b, rm, rv = make_case(keys[3], (2, 4, 16, 16))
    out, nrm, nrv = jax.block_until_ready(fwd_eval(x, w, b, rm, rv))
    ro = eval_ref(x, w, b, rm, rv)
    assert jnp.allclose(out, ro, atol=1e-4, rtol=1e-4), "eval output mismatch"
    assert jnp.allclose(nrm, rm) and jnp.allclose(nrv, rv), "eval stats must not change"

    print("KERNEL_OK")
</pallas_src>

<mosaic_0001>
module attributes {stable_mosaic.version = 11 : i64} {
  func.func @kernel(%arg0: i32, %arg1: memref<2x4x256xf32, #tpu.memory_space<vmem>>, %arg2: memref<4x1xf32, #tpu.memory_space<vmem>>, %arg3: memref<4x1xf32, #tpu.memory_space<vmem>>, %arg4: memref<2x4x256xf32, #tpu.memory_space<vmem>>, %arg5: memref<4x1xf32, #tpu.memory_space<vmem>>, %arg6: memref<4x1xf32, #tpu.memory_space<vmem>>) attributes {dimension_semantics = [#tpu.dimension_semantics<arbitrary>], iteration_bounds = array<i64: 1>, scalar_prefetch = 0 : i64, scratch_operands = 0 : i64, tpu.core_type = #tpu.core_type<tc>, window_params = [{pipeline_mode = #tpu.pipeline_mode<synchronous>, transform_indices = @transform_0, window_bounds = array<i64: 2, 4, 256>}, {pipeline_mode = #tpu.pipeline_mode<synchronous>, transform_indices = @transform_1, window_bounds = array<i64: 4, 1>}, {pipeline_mode = #tpu.pipeline_mode<synchronous>, transform_indices = @transform_2, window_bounds = array<i64: 4, 1>}, {pipeline_mode = #tpu.pipeline_mode<synchronous>, transform_indices = @transform_3, window_bounds = array<i64: 2, 4, 256>}, {pipeline_mode = #tpu.pipeline_mode<synchronous>, transform_indices = @transform_4, window_bounds = array<i64: 4, 1>}, {pipeline_mode = #tpu.pipeline_mode<synchronous>, transform_indices = @transform_5, window_bounds = array<i64: 4, 1>}]} {
    %c0 = arith.constant 0 : index
    %c0_0 = arith.constant 0 : index
    %c0_1 = arith.constant 0 : index
    %0 = vector.load %arg1[%c0, %c0_0, %c0_1] : memref<2x4x256xf32, #tpu.memory_space<vmem>>, vector<2x4x256xf32>
    %cst = arith.constant dense<0.000000e+00> : vector<2x4xf32>
    %1 = vector.multi_reduction <add>, %0, %cst [2] : vector<2x4x256xf32> to vector<2x4xf32>
    %2 = vector.shape_cast %1 : vector<2x4xf32> to vector<2x4x1xf32>
    %cst_2 = arith.constant dense<0.000000e+00> : vector<4x1xf32>
    %3 = vector.multi_reduction <add>, %2, %cst_2 [0] : vector<2x4x1xf32> to vector<4x1xf32>
    %4 = vector.shape_cast %3 : vector<4x1xf32> to vector<1x4x1xf32>
    %cst_3 = arith.constant 0.001953125 : f32
    %5 = vector.broadcast %cst_3 : f32 to vector<1x4x1xf32>
    %6 = arith.mulf %4, %5 : vector<1x4x1xf32>
    %7 = vector.broadcast %6 : vector<1x4x1xf32> to vector<2x4x256xf32>
    %8 = arith.subf %0, %7 : vector<2x4x256xf32>
    %9 = arith.mulf %8, %8 : vector<2x4x256xf32>
    %cst_4 = arith.constant dense<0.000000e+00> : vector<2x4xf32>
    %10 = vector.multi_reduction <add>, %9, %cst_4 [2] : vector<2x4x256xf32> to vector<2x4xf32>
    %11 = vector.shape_cast %10 : vector<2x4xf32> to vector<2x4x1xf32>
    %cst_5 = arith.constant dense<0.000000e+00> : vector<4x1xf32>
    %12 = vector.multi_reduction <add>, %11, %cst_5 [0] : vector<2x4x1xf32> to vector<4x1xf32>
    %13 = vector.shape_cast %12 : vector<4x1xf32> to vector<1x4x1xf32>
    %cst_6 = arith.constant 0.001953125 : f32
    %14 = vector.broadcast %cst_6 : f32 to vector<1x4x1xf32>
    %15 = arith.mulf %13, %14 : vector<1x4x1xf32>
    %cst_7 = arith.constant 9.99999974E-6 : f32
    %16 = vector.broadcast %cst_7 : f32 to vector<1x4x1xf32>
    %17 = arith.addf %15, %16 : vector<1x4x1xf32>
    %18 = math.rsqrt %17 : vector<1x4x1xf32>
    %c0_8 = arith.constant 0 : index
    %c0_9 = arith.constant 0 : index
    %19 = vector.load %arg2[%c0_8, %c0_9] : memref<4x1xf32, #tpu.memory_space<vmem>>, vector<4x1xf32>
    %20 = vector.shape_cast %19 : vector<4x1xf32> to vector<1x4x1xf32>
    %21 = arith.mulf %20, %18 : vector<1x4x1xf32>
    %c0_10 = arith.constant 0 : index
    %c0_11 = arith.constant 0 : index
    %22 = vector.load %arg3[%c0_10, %c0_11] : memref<4x1xf32, #tpu.memory_space<vmem>>, vector<4x1xf32>
    %23 = vector.shape_cast %22 : vector<4x1xf32> to vector<1x4x1xf32>
    %24 = arith.mulf %6, %21 : vector<1x4x1xf32>
    %25 = arith.subf %23, %24 : vector<1x4x1xf32>
    %26 = vector.broadcast %21 : vector<1x4x1xf32> to vector<2x4x256xf32>
    %27 = arith.mulf %0, %26 : vector<2x4x256xf32>
    %28 = vector.broadcast %25 : vector<1x4x1xf32> to vector<2x4x256xf32>
    %29 = arith.addf %27, %28 : vector<2x4x256xf32>
    %c0_12 = arith.constant 0 : index
    %c0_13 = arith.constant 0 : index
    %c0_14 = arith.constant 0 : index
    %30 = vector.load %arg4[%c0_12, %c0_13, %c0_14] : memref<2x4x256xf32, #tpu.memory_space<vmem>>, vector<2x4x256xf32>
    tpu.vector_store %arg4[%c0_12, %c0_13, %c0_14], %29 {strides = array<i32>} : memref<2x4x256xf32, #tpu.memory_space<vmem>>, vector<2x4x256xf32>,
    %31 = vector.shape_cast %6 : vector<1x4x1xf32> to vector<4x1xf32>
    %c0_15 = arith.constant 0 : index
    %c0_16 = arith.constant 0 : index
    %32 = vector.load %arg5[%c0_15, %c0_16] : memref<4x1xf32, #tpu.memory_space<vmem>>, vector<4x1xf32>
    tpu.vector_store %arg5[%c0_15, %c0_16], %31 {strides = array<i32>} : memref<4x1xf32, #tpu.memory_space<vmem>>, vector<4x1xf32>,
    %33 = vector.shape_cast %15 : vector<1x4x1xf32> to vector<4x1xf32>
    %c0_17 = arith.constant 0 : index
    %c0_18 = arith.constant 0 : index
    %34 = vector.load %arg6[%c0_17, %c0_18] : memref<4x1xf32, #tpu.memory_space<vmem>>, vector<4x1xf32>
    tpu.vector_store %arg6[%c0_17, %c0_18], %33 {strides = array<i32>} : memref<4x1xf32, #tpu.memory_space<vmem>>, vector<4x1xf32>,
    return
  }
  func.func @transform_0(%arg0: i32) -> (i32, i32, i32) {
    %c0_i32 = arith.constant 0 : i32
    %c0_i32_0 = arith.constant 0 : i32
    %c0_i32_1 = arith.constant 0 : i32
    %c0_i32_2 = arith.constant 0 : i32
    return %c0_i32, %c0_i32_0, %c0_i32_1 : i32, i32, i32
  }
  func.func @transform_1(%arg0: i32) -> (i32, i32) {
    %c0_i32 = arith.constant 0 : i32
    %c0_i32_0 = arith.constant 0 : i32
    %c0_i32_1 = arith.constant 0 : i32
    return %c0_i32, %c0_i32_0 : i32, i32
  }
  func.func @transform_2(%arg0: i32) -> (i32, i32) {
    %c0_i32 = arith.constant 0 : i32
    %c0_i32_0 = arith.constant 0 : i32
    %c0_i32_1 = arith.constant 0 : i32
    return %c0_i32, %c0_i32_0 : i32, i32
  }
  func.func @transform_3(%arg0: i32) -> (i32, i32, i32) {
    %c0_i32 = arith.constant 0 : i32
    %c0_i32_0 = arith.constant 0 : i32
    %c0_i32_1 = arith.constant 0 : i32
    %c0_i32_2 = arith.constant 0 : i32
    return %c0_i32, %c0_i32_0, %c0_i32_1 : i32, i32, i32
  }
  func.func @transform_4(%arg0: i32) -> (i32, i32) {
    %c0_i32 = arith.constant 0 : i32
    %c0_i32_0 = arith.constant 0 : i32
    %c0_i32_1 = arith.constant 0 : i32
    return %c0_i32, %c0_i32_0 : i32, i32
  }
  func.func @transform_5(%arg0: i32) -> (i32, i32) {
    %c0_i32 = arith.constant 0 : i32
    %c0_i32_0 = arith.constant 0 : i32
    %c0_i32_1 = arith.constant 0 : i32
    return %c0_i32, %c0_i32_0 : i32, i32
  }
}

</mosaic_0001>

<bundles_post_ra>
// kernel: translayer_rule4_forward.1
= control target key start
LH: loop header
LB: loop body
LE: loop exit
PB: predicated region body
PF: predicated region fallthrough
CT: control target
= control target key end

     0   :  { %vm25_vm0 = vcmask 1043456   ;;  %v133_v10 = vmov 839922192   ;;  %v44_v12 = vlaneseq  ;;  %vm110_vm1 = vcmask 3072   ;;  %s217_s0 = inlined_call_operand.vmem [shape: f32[2,4,256], index: 0, kind: input, shape index: {}]   ;;  %s218_s4 = inlined_call_operand.vmem [shape: f32[4,1], index: 4, kind: output, shape index: {1}]   ;;  %s219_s5 = inlined_call_operand.vmem [shape: f32[4,1], index: 5, kind: output, shape index: {2}]   ;;  %s220_s1 = inlined_call_operand.vmem [shape: f32[4,1], index: 1, kind: input, shape index: {}]   ;;  %s221_s2 = inlined_call_operand.vmem [shape: f32[4,1], index: 2, kind: input, shape index: {}]   ;;  %s222_s3 = inlined_call_operand.vmem [shape: f32[2,4,256], index: 3, kind: output, shape index: {0}]  }
   0x1   :  { %v168_v0 = vld [vmem:[%s217_s0] sm:$0xff]  ;;  %v173_v1 = vld [vmem:[%s217_s0 + $0x8] sm:$0xff]  ;;  %v42_v11 = vunpack.c.l.s4 %v133_v10  ;;  %v134_v35 = vmov 0  }
   0x2   :  { %v21_v2 = vcombine.high %v168_v0, %v168_v0  ;;  %v26_v3 = vsel %vm25_vm0, %v168_v0, 0.0  ;;  %v22_v4 = vcombine.high %v173_v1, %v173_v1  ;;  %v31_v6 = vsel %vm25_vm0, %v173_v1, 0.0  ;;  %127 = vset.pattern.permute.xlu0 %v134_v35  ;;  %128 = vset.pattern.permute.xlu1 %v134_v35  ;;  %v75_v43 = vld [vmem:[%s220_s1] sm:$0xf] }
   0x3   :  { %v43_v14 = vunpack.c.0.s8 %v42_v11  ;;  %v45_v15 = vshrl.u32 %v44_v12, 7  ;;  %v77_v46 = vld [vmem:[%s221_s2] sm:$0xf] }
   0x4   :  { %v27_v5 = vsel %vm25_vm0, %v21_v2, 0.0  ;;  %v32_v7 = vsel %vm25_vm0, %v22_v4, 0.0 }
   0x5   :  { %v28_v8 = vadd.f32 %v27_v5, %v26_v3  ;;  %v33_v9 = vadd.f32 %v32_v7, %v31_v6  ;;  %v46_v20 = vsub.s32 %v43_v14, %v45_v15 }
   0x7   :  { %29 = vadd.xlane.f32.xlu0 %v28_v8 }
   0xb   :  { %34 = vadd.xlane.f32.xlu0 %v33_v9 }
  0x94   :  { %v30_v13 = vpop.xlane.xlu0 %29 }
  0x95   :  { %v36_v17 = vsel %vm25_vm0, %v30_v13, 0.0 }
  0x98   :  { %v35_v16 = vpop.xlane.xlu0 %34 }
  0x99   :  { %v37_v18 = vsel %vm25_vm0, %v35_v16, 0.0 }
  0x9a   :  { %v38_v19 = vadd.f32 %v37_v18, %v36_v17 }
  0x9c   :  { %v39_v21 = vmul.f32 0.001953125, %v38_v19 }
  0x9e   :  { %111 = vst.msk [vmem:[%s218_s4] sm:$0xf] %vm110_vm1, %v39_v21  ;;  %v47_v22 = vrot.slane %v39_v21, %v46_v20 }
  0xa0   :  { %v49_v23 = vsub.f32 %v168_v0, %v47_v22  ;;  %v50_v24 = vsub.f32 %v173_v1, %v47_v22 }
  0xa2   :  { %v51_v25 = vmul.f32 %v49_v23, %v49_v23  ;;  %v52_v26 = vmul.f32 %v50_v24, %v50_v24 }
  0xa4   :  { %v55_v27 = vcombine.high %v51_v25, %v51_v25  ;;  %v56_v28 = vcombine.high %v52_v26, %v52_v26  ;;  %v59_v29 = vsel %vm25_vm0, %v51_v25, 0.0  ;;  %v64_v33 = vsel %vm25_vm0, %v52_v26, 0.0 }
  0xa6   :  { %v60_v30 = vsel %vm25_vm0, %v55_v27, 0.0  ;;  %v65_v32 = vsel %vm25_vm0, %v56_v28, 0.0 }
  0xa7   :  { %v61_v31 = vadd.f32 %v60_v30, %v59_v29  ;;  %v66_v34 = vadd.f32 %v65_v32, %v64_v33 }
  0xa9   :  { %62 = vadd.xlane.f32.xlu1 %v61_v31 }
  0xad   :  { %67 = vadd.xlane.f32.xlu1 %v66_v34 }
 0x136   :  { %v63_v36 = vpop.xlane.xlu1 %62 }
 0x137   :  { %v69_v38 = vsel %vm25_vm0, %v63_v36, 0.0 }
 0x13a   :  { %v68_v37 = vpop.xlane.xlu1 %67 }
 0x13b   :  { %v70_v39 = vsel %vm25_vm0, %v68_v37, 0.0 }
 0x13c   :  { %v71_v40 = vadd.f32 %v70_v39, %v69_v38 }
 0x13e   :  { %v72_v41 = vmul.f32 0.001953125, %v71_v40 }
 0x140   :  { %v73_v42 = vadd.f32 1e-05, %v72_v41  ;;  %112 = vst.msk [vmem:[%s219_s5] sm:$0xf] %vm110_vm1, %v72_v41 }
 0x142   :  { %131 = vrsqrt.f32 %v73_v42 }
 0x14c   :  { %v132_v44 = vpop.eup %131 }
 0x14d   :  { %v76_v45 = vmul.f32 %v132_v44, %v75_v43 }
 0x14f   :  { %82 = vperm.xlu0 %127, %v76_v45   ;;  %v78_v47 = vmul.f32 %v76_v45, %v39_v21 }
 0x151   :  { %v79_v48 = vsub.f32 %v77_v46, %v78_v47 }
 0x153   :  { %96 = vperm.xlu1 %128, %v79_v48  }
 0x1ce   :  { %v83_v49 = vpop.permute.xlu0 %82 }
 0x1cf   :  { %v90_v50 = vrot.slane %v83_v49, %v46_v20 }
 0x1d1   :  { %v92_v52 = vmul.f32 %v90_v50, %v168_v0  ;;  %v93_v53 = vmul.f32 %v90_v50, %v173_v1 }
 0x1d2   :  { %v97_v51 = vpop.permute.xlu1 %96 }
 0x1d3   :  { %v104_v54 = vrot.slane %v97_v51, %v46_v20 }
 0x1d5   :  { %v106_v55 = vadd.f32 %v104_v54, %v92_v52  ;;  %v107_v56 = vadd.f32 %v104_v54, %v93_v53 }
 0x1d7   :  { %108 = vst [vmem:[%s222_s3] sm:$0xff] %v106_v55  ;;  %109 = vst [vmem:[%s222_s3 + $0x8] sm:$0xff] %v107_v56 }

</bundles_post_ra>
